<compile_context>
chip_gen: v6e
topology: v6e:2x2x1
jax: 0.10.0
libtpu: 0.0.40
codegen_flags: <defaults>
</compile_context>

<pallas_src>
import jax
import jax.numpy as jnp
from jax import lax
from jax.experimental import pallas as pl
from jax.experimental.pallas import tpu as pltpu

# ----------------------------- scaled-down config -----------------------------
IMG_SIZE = 64        # input spatial size
POOL_SIZE = 32       # face_pool target        (stand-in for 224)
PATCH = 8            # ViT patch size          (stand-in for 32)
GRID = POOL_SIZE // PATCH            # 4
NUM_PATCHES = GRID * GRID            # 16
PATCH_DIM = 3 * PATCH * PATCH        # 192
WIDTH = 128          # transformer width       (stand-in for 768, lane-dense)
LAYERS = 2           # transformer depth       (stand-in for 12)
HEADS = 4            # attention heads         (stand-in for 12)
HEAD_DIM = WIDTH // HEADS            # 32
EMBED = 128          # output embedding dim    (stand-in for 512, lane-dense)
T_REAL = NUM_PATCHES + 1             # 17 tokens (CLS + patches)
T_PAD = 24                           # padded token count (multiple of 8)

CLIP_MEAN = (0.48145466, 0.4578275, 0.40821073)
CLIP_STD = (0.26862954, 0.26130258, 0.27577711)
# fold (x*0.5 + 0.5 - mean)/std into a per-channel affine (compile-time consts)
PRE_SCALE = tuple(0.5 / s for s in CLIP_STD)
PRE_BIAS = tuple((0.5 - m) / s for m, s in zip(CLIP_MEAN, CLIP_STD))

VMEM = pltpu.MemorySpace.VMEM


# ================================ Pallas kernels ===============================

def _preprocess_kernel(x_ref, pwt_ref, phs_ref, bias_ref, o_ref):
    """AdaptiveAvgPool2d + folded (x*0.5+0.5 - mean)/std affine.

    One grid step per image.  x_ref is (1, 3H, W); the channel-block-diagonal
    pool-over-H matrix carries the per-channel CLIP scale, the bias is a
    precomputed (3P, P) slab.  Two matmuls total, one store.
    """
    x = x_ref[0]                                                       # (3H, W)
    t = jnp.dot(x, pwt_ref[...], preferred_element_type=jnp.float32)   # (3H, P)
    p = jnp.dot(phs_ref[...], t, preferred_element_type=jnp.float32)   # (3P, P)
    o_ref[0] = p + bias_ref[...]


def _layernorm(x, g, b):
    mu = jnp.mean(x, axis=-1, keepdims=True)
    xc = x - mu
    var = jnp.mean(xc * xc, axis=-1, keepdims=True)
    return xc * lax.rsqrt(var + 1e-5) * g + b


def _encoder_kernel(patches_ref, w_patch_ref, cls_pos_ref,
                    ln_pre_g_ref, ln_pre_b_ref,
                    ln1_g_ref, ln1_b_ref, w_qkv_ref, b_qkv_ref,
                    w_out_ref, b_out_ref, ln2_g_ref, ln2_b_ref,
                    w_fc1_ref, b_fc1_ref, w_fc2_ref, b_fc2_ref,
                    ln_post_g_ref, ln_post_b_ref, w_proj_ref,
                    feat_ref):
    """Whole CLIP ViT image encoder for one image, activations VMEM-resident."""
    # conv1 (stride = patch, no bias) as a matmul over flattened patches.
    tok = jnp.dot(patches_ref[0], w_patch_ref[...],
                  preferred_element_type=jnp.float32)                  # (16, D)
    pad_top = jnp.zeros((1, WIDTH), jnp.float32)
    pad_bot = jnp.zeros((T_PAD - T_REAL, WIDTH), jnp.float32)
    tok_full = jnp.concatenate([pad_top, tok, pad_bot], axis=0)        # (T_PAD, D)
    # CLS token + positional embedding folded in (padded rows are zero).
    x = cls_pos_ref[...] + tok_full
    x = _layernorm(x, ln_pre_g_ref[...], ln_pre_b_ref[...])

    # Padded tokens (index >= T_REAL) are masked out of the attention softmax.
    key_valid = lax.broadcasted_iota(jnp.int32, (T_PAD, T_PAD), 1) < T_REAL
    scale = HEAD_DIM ** -0.5

    for l in range(LAYERS):
        # ---------------- x = x + attn(ln_1(x)) ----------------
        y = _layernorm(x, ln1_g_ref[l], ln1_b_ref[l])
        qkv = jnp.dot(y, w_qkv_ref[l], preferred_element_type=jnp.float32)
        qkv = qkv + b_qkv_ref[l]                                       # (T_PAD, 3D)
        heads = []
        for h in range(HEADS):
            q = qkv[:, h * HEAD_DIM:(h + 1) * HEAD_DIM]
            k = qkv[:, WIDTH + h * HEAD_DIM:WIDTH + (h + 1) * HEAD_DIM]
            v = qkv[:, 2 * WIDTH + h * HEAD_DIM:2 * WIDTH + (h + 1) * HEAD_DIM]
            s = lax.dot_general(q, k, (((1,), (1,)), ((), ())),
                                preferred_element_type=jnp.float32) * scale
            s = jnp.where(key_valid, s, -1e30)
            s = s - jnp.max(s, axis=-1, keepdims=True)
            p = jnp.exp(s)
            p = p * pl.reciprocal(jnp.sum(p, axis=-1, keepdims=True), approx=True)
            heads.append(jnp.dot(p, v, preferred_element_type=jnp.float32))
        attn = jnp.concatenate(heads, axis=-1)                         # (T_PAD, D)
        o = jnp.dot(attn, w_out_ref[l], preferred_element_type=jnp.float32)
        x = x + o + b_out_ref[l]                                       # residual 1
        # ---------------- x = x + mlp(ln_2(x)) -----------------
        y = _layernorm(x, ln2_g_ref[l], ln2_b_ref[l])
        f = jnp.dot(y, w_fc1_ref[l], preferred_element_type=jnp.float32)
        f = f + b_fc1_ref[l]
        f = f * jax.nn.sigmoid(1.702 * f)                              # QuickGELU
        m = jnp.dot(f, w_fc2_ref[l], preferred_element_type=jnp.float32)
        x = x + m + b_fc2_ref[l]                                       # residual 2

    # ln_post(CLS) @ proj, then L2 feature normalization (eps-clamped).
    cls_tok = _layernorm(x[0:1, :], ln_post_g_ref[...], ln_post_b_ref[...])
    feat = jnp.dot(cls_tok, w_proj_ref[...], preferred_element_type=jnp.float32)
    inv = lax.rsqrt(jnp.maximum(jnp.sum(feat * feat, axis=-1, keepdims=True),
                                1e-24))
    feat_ref[0] = feat * inv                                           # (1, E)


def _cosine_loss_kernel(a_ref, d_ref, o_ref):
    """CosineEmbeddingLoss with target = +1, mean reduction; d broadcast over rows."""
    a = a_ref[...]                                                     # (N, E)
    d = d_ref[...]                                                     # (1, E)
    dot = jnp.sum(a * d, axis=-1, keepdims=True)                       # (N, 1)
    na2 = jnp.sum(a * a, axis=-1, keepdims=True)
    nd2 = jnp.sum(d * d, axis=-1, keepdims=True)
    cos = dot * lax.rsqrt(jnp.maximum(na2 * nd2, 1e-16))
    o_ref[...] = jnp.mean(1.0 - cos, axis=0, keepdims=True)            # (1, 1)


def _delta_cosine_loss_kernel(fg_ref, fi_ref, d_ref, o_ref):
    """Fused: a = normalize(f_g - f_i); mean(1 - cos(a, delta_i))."""
    dvec = fg_ref[...] - fi_ref[...]                                   # (N, E)
    inv = lax.rsqrt(jnp.maximum(jnp.sum(dvec * dvec, axis=-1, keepdims=True),
                                1e-24))
    a = dvec * inv
    d = d_ref[...]                                                     # (1, E)
    dot = jnp.sum(a * d, axis=-1, keepdims=True)
    na2 = jnp.sum(a * a, axis=-1, keepdims=True)
    nd2 = jnp.sum(d * d, axis=-1, keepdims=True)
    cos = dot * lax.rsqrt(jnp.maximum(na2 * nd2, 1e-16))
    o_ref[...] = jnp.mean(1.0 - cos, axis=0, keepdims=True)            # (1, 1)


# ================================ Pallas wrappers ==============================

def preprocess(x):
    """face_pool(x); transform(x*0.5+0.5).  x: (N, 3, H, W) -> (N, 3, P, P)."""
    n, c, h, w = x.shape
    p = POOL_SIZE
    assert c == 3 and h % p == 0 and w % p == 0   # divisible == exact adaptive pool
    kh, kw = h // p, w // p

    # pool-over-W matrix (shared by all channels), pre-transposed: (W, P)
    pool_w_t = jnp.where((jnp.arange(w)[:, None] // kw) == jnp.arange(p)[None, :],
                         1.0 / kw, 0.0).astype(jnp.float32)
    # pool-over-H, channel-block-diagonal, with CLIP scale folded in: (3P, 3H)
    rows = jnp.arange(3 * p)
    cols = jnp.arange(3 * h)
    row_c, row_p = rows // p, rows % p
    col_c, col_h = cols // h, cols % h
    phs = jnp.where((row_c[:, None] == col_c[None, :]) &
                    ((col_h[None, :] // kh) == row_p[:, None]), 1.0, 0.0)
    scale_rows = jnp.asarray(PRE_SCALE, jnp.float32)[row_c] / kh
    phs = (phs * scale_rows[:, None]).astype(jnp.float32)              # (3P, 3H)
    bias = jnp.broadcast_to(
        jnp.repeat(jnp.asarray(PRE_BIAS, jnp.float32), p)[:, None], (3 * p, p))

    x2 = x.reshape(n, 3 * h, w)                                        # free HBM reshape
    pooled = pl.pallas_call(
        _preprocess_kernel,
        out_shape=jax.ShapeDtypeStruct((n, 3 * p, p), jnp.float32),
        grid=(n,),
        in_specs=[pl.BlockSpec((1, 3 * h, w), lambda i: (i, 0, 0)),
                  pl.BlockSpec((w, p), lambda i: (0, 0)),
                  pl.BlockSpec((3 * p, 3 * h), lambda i: (0, 0)),
                  pl.BlockSpec((3 * p, p), lambda i: (0, 0))],
        out_specs=pl.BlockSpec((1, 3 * p, p), lambda i: (i, 0, 0)),
        compiler_params=pltpu.CompilerParams(dimension_semantics=("parallel",)),
    )(x2, pool_w_t, phs, bias)
    return pooled.reshape(n, 3, p, p)


_WEIGHT_ORDER = ("w_patch", "cls_pos", "ln_pre_g", "ln_pre_b",
                 "ln1_g", "ln1_b", "w_qkv", "b_qkv", "w_out", "b_out",
                 "ln2_g", "ln2_b", "w_fc1", "b_fc1", "w_fc2", "b_fc2",
                 "ln_post_g", "ln_post_b", "w_proj")


def encode_image(x_nchw, params):
    """face_pool -> renorm -> CLIP ViT encoder -> L2-normalized (N, EMBED)."""
    n = x_nchw.shape[0]
    pooled = preprocess(x_nchw)                                        # (N, 3, P, P)
    # patch extraction (layout glue) matching conv1 weight order (c, ph, pw)
    patches = pooled.reshape(n, 3, GRID, PATCH, GRID, PATCH)
    patches = patches.transpose(0, 2, 4, 1, 3, 5).reshape(n, NUM_PATCHES, PATCH_DIM)

    weights = [params[k] for k in _WEIGHT_ORDER]

    def full_spec(a):
        nd = a.ndim
        return pl.BlockSpec(a.shape, lambda i: (0,) * nd)

    feat = pl.pallas_call(
        _encoder_kernel,
        out_shape=jax.ShapeDtypeStruct((n, 1, EMBED), jnp.float32),
        grid=(n,),
        in_specs=[pl.BlockSpec((1, NUM_PATCHES, PATCH_DIM), lambda i: (i, 0, 0))]
                 + [full_spec(wt) for wt in weights],
        out_specs=pl.BlockSpec((1, 1, EMBED), lambda i: (i, 0, 0)),
        compiler_params=pltpu.CompilerParams(dimension_semantics=("parallel",)),
    )(patches, *weights)
    return feat.reshape(n, EMBED)


def cosine_embedding_loss(a, d_row):
    return pl.pallas_call(
        _cosine_loss_kernel,
        out_shape=jax.ShapeDtypeStruct((1, 1), jnp.float32),
        in_specs=[pl.BlockSpec(memory_space=VMEM)] * 2,
        out_specs=pl.BlockSpec(memory_space=VMEM),
    )(a, d_row)


def delta_cosine_loss(f_g, f_i, d_row):
    return pl.pallas_call(
        _delta_cosine_loss_kernel,
        out_shape=jax.ShapeDtypeStruct((1, 1), jnp.float32),
        in_specs=[pl.BlockSpec(memory_space=VMEM)] * 3,
        out_specs=pl.BlockSpec(memory_space=VMEM),
    )(f_g, f_i, d_row)


# ============================ parameter construction ===========================

def init_params(key):
    keys = jax.random.split(key, 5)

    def nrm(k, shape, scale=0.02):
        return (scale * jax.random.normal(k, shape)).astype(jnp.float32)

    conv_w = nrm(keys[0], (WIDTH, 3, PATCH, PATCH))                    # conv1, no bias
    class_emb = nrm(keys[1], (WIDTH,))
    pos_emb = nrm(keys[2], (T_REAL, WIDTH), 0.01)
    # class token + positional embedding combined; padded rows stay zero.
    cls_pos = jnp.zeros((T_PAD, WIDTH), jnp.float32)
    cls_pos = cls_pos.at[0].set(class_emb + pos_emb[0])
    cls_pos = cls_pos.at[1:T_REAL].set(pos_emb[1:])

    w_qkv, w_out, w_fc1, w_fc2 = [], [], [], []
    for lk in jax.random.split(keys[3], LAYERS):
        k0, k1, k2, k3 = jax.random.split(lk, 4)
        w_qkv.append(nrm(k0, (WIDTH, 3 * WIDTH)))
        w_out.append(nrm(k1, (WIDTH, WIDTH)))
        w_fc1.append(nrm(k2, (WIDTH, 4 * WIDTH)))
        w_fc2.append(nrm(k3, (4 * WIDTH, WIDTH)))

    ones = lambda *s: jnp.ones(s, jnp.float32)
    zeros = lambda *s: jnp.zeros(s, jnp.float32)
    return {
        "w_patch": conv_w.reshape(WIDTH, PATCH_DIM).T,                 # (PD, D)
        "cls_pos": cls_pos,                                            # (T_PAD, D)
        "ln_pre_g": ones(1, WIDTH), "ln_pre_b": zeros(1, WIDTH),
        "ln1_g": ones(LAYERS, 1, WIDTH), "ln1_b": zeros(LAYERS, 1, WIDTH),
        "w_qkv": jnp.stack(w_qkv), "b_qkv": zeros(LAYERS, 1, 3 * WIDTH),
        "w_out": jnp.stack(w_out), "b_out": zeros(LAYERS, 1, WIDTH),
        "ln2_g": ones(LAYERS, 1, WIDTH), "ln2_b": zeros(LAYERS, 1, WIDTH),
        "w_fc1": jnp.stack(w_fc1), "b_fc1": zeros(LAYERS, 1, 4 * WIDTH),
        "w_fc2": jnp.stack(w_fc2), "b_fc2": zeros(LAYERS, 1, WIDTH),
        "ln_post_g": ones(1, WIDTH), "ln_post_b": zeros(1, WIDTH),
        "w_proj": nrm(keys[4], (WIDTH, EMBED)),                        # visual.proj
    }


# ================================ module forward ===============================

def image_embedding_loss_forward(params, masked_generated=None,
                                 masked_img_tensor=None, delta=False,
                                 delta_i=None):
    # TODO(synk): `text` branch (templates.txt + clip.tokenize + encode_text)
    # is not translatable; delta_i is supplied directly, as the forward allows.
    d_row = delta_i.reshape(1, EMBED)
    if delta:
        # Encode both batches in a SINGLE pallas_call so encoder weights are
        # streamed to VMEM once, then fuse delta-renorm + cosine loss.
        n = masked_generated.shape[0]
        both = jnp.concatenate([masked_generated, masked_img_tensor], axis=0)
        feats = encode_image(both, params)                 # (2N, EMBED), L2-normed
        similarity = delta_cosine_loss(feats[:n], feats[n:], d_row)
    else:
        f_g = encode_image(masked_generated, params)       # L2-normalized in-kernel
        # (masked_img_tensor feature is unused by the loss when delta=False)
        similarity = cosine_embedding_loss(f_g, d_row)
    return similarity


# ==================================== main =====================================

if __name__ == "__main__":
    key = jax.random.PRNGKey(0)
    k_gen, k_img, k_delta, k_param = jax.random.split(key, 4)

    batch = 2
    masked_generated = jax.random.normal(k_gen, (batch, 3, IMG_SIZE, IMG_SIZE),
                                         jnp.float32)
    masked_img_tensor = jax.random.normal(k_img, (batch, 3, IMG_SIZE, IMG_SIZE),
                                          jnp.float32)
    delta_i = jax.random.normal(k_delta, (EMBED,), jnp.float32)

    params = init_params(k_param)

    out = image_embedding_loss_forward(params,
                                       masked_generated=masked_generated,
                                       masked_img_tensor=masked_img_tensor,
                                       delta=True,
                                       delta_i=delta_i)
    out = jax.block_until_ready(out)
    assert out.shape == (1, 1) and out.dtype == jnp.float32
    assert bool(jnp.isfinite(out).all())
    print("KERNEL_OK")
</pallas_src>

<mosaic_0001>
module attributes {stable_mosaic.version = 11 : i64} {
  func.func @_preprocess_kernel(%arg0: i32, %arg1: memref<1x192x64xf32, #tpu.memory_space<vmem>>, %arg2: memref<64x32xf32, #tpu.memory_space<vmem>>, %arg3: memref<96x192xf32, #tpu.memory_space<vmem>>, %arg4: memref<96x32xf32, #tpu.memory_space<vmem>>, %arg5: memref<1x96x32xf32, #tpu.memory_space<vmem>>) attributes {dimension_semantics = [#tpu.dimension_semantics<parallel>], iteration_bounds = array<i64: 4>, scalar_prefetch = 0 : i64, scratch_operands = 0 : i64, tpu.core_type = #tpu.core_type<tc>, window_params = [{transform_indices = @transform_0, window_bounds = array<i64: 1, 192, 64>}, {pipeline_mode = #tpu.pipeline_mode<synchronous>, transform_indices = @transform_1, window_bounds = array<i64: 64, 32>}, {pipeline_mode = #tpu.pipeline_mode<synchronous>, transform_indices = @transform_2, window_bounds = array<i64: 96, 192>}, {pipeline_mode = #tpu.pipeline_mode<synchronous>, transform_indices = @transform_3, window_bounds = array<i64: 96, 32>}, {transform_indices = @transform_4, window_bounds = array<i64: 1, 96, 32>}]} {
    %c0 = arith.constant 0 : index
    %c0_0 = arith.constant 0 : index
    %c0_1 = arith.constant 0 : index
    %0 = vector.load %arg1[%c0, %c0_0, %c0_1] : memref<1x192x64xf32, #tpu.memory_space<vmem>>, vector<1x192x64xf32>
    %1 = vector.shape_cast %0 : vector<1x192x64xf32> to vector<192x64xf32>
    %c0_2 = arith.constant 0 : index
    %c0_3 = arith.constant 0 : index
    %2 = vector.load %arg2[%c0_2, %c0_3] : memref<64x32xf32, #tpu.memory_space<vmem>>, vector<64x32xf32>
    %cst = arith.constant dense<0.000000e+00> : vector<192x32xf32>
    %3 = tpu.matmul %1, %2, %cst {dimension_numbers = #tpu.dot_dimension_numbers<[1], [0], [0], [1], [0, 0, 1, 1], [], []>} : vector<192x64xf32>, vector<64x32xf32>, vector<192x32xf32> -> vector<192x32xf32>
    %c0_4 = arith.constant 0 : index
    %c0_5 = arith.constant 0 : index
    %4 = vector.load %arg3[%c0_4, %c0_5] : memref<96x192xf32, #tpu.memory_space<vmem>>, vector<96x192xf32>
    %cst_6 = arith.constant dense<0.000000e+00> : vector<96x32xf32>
    %5 = tpu.matmul %4, %3, %cst_6 {dimension_numbers = #tpu.dot_dimension_numbers<[1], [0], [0], [1], [0, 0, 1, 1], [], []>} : vector<96x192xf32>, vector<192x32xf32>, vector<96x32xf32> -> vector<96x32xf32>
    %c0_7 = arith.constant 0 : index
    %c0_8 = arith.constant 0 : index
    %6 = vector.load %arg4[%c0_7, %c0_8] : memref<96x32xf32, #tpu.memory_space<vmem>>, vector<96x32xf32>
    %7 = arith.addf %5, %6 : vector<96x32xf32>
    %c0_9 = arith.constant 0 : index
    %c0_10 = arith.constant 0 : index
    %c0_11 = arith.constant 0 : index
    %8 = vector.load %arg5[%c0_9, %c0_10, %c0_11] : memref<1x96x32xf32, #tpu.memory_space<vmem>>, vector<1x96x32xf32>
    %9 = vector.shape_cast %8 : vector<1x96x32xf32> to vector<96x32xf32>
    %10 = vector.shape_cast %7 : vector<96x32xf32> to vector<1x96x32xf32>
    tpu.vector_store %arg5[%c0_9, %c0_10, %c0_11], %10 {strides = array<i32>} : memref<1x96x32xf32, #tpu.memory_space<vmem>>, vector<1x96x32xf32>,
    return
  }
  func.func @transform_0(%arg0: i32) -> (i32, i32, i32) {
    %c0_i32 = arith.constant 0 : i32
    %c0_i32_0 = arith.constant 0 : i32
    %c0_i32_1 = arith.constant 0 : i32
    return %arg0, %c0_i32, %c0_i32_0 : i32, i32, i32
  }
  func.func @transform_1(%arg0: i32) -> (i32, i32) {
    %c0_i32 = arith.constant 0 : i32
    %c0_i32_0 = arith.constant 0 : i32
    %c0_i32_1 = arith.constant 0 : i32
    return %c0_i32, %c0_i32_0 : i32, i32
  }
  func.func @transform_2(%arg0: i32) -> (i32, i32) {
    %c0_i32 = arith.constant 0 : i32
    %c0_i32_0 = arith.constant 0 : i32
    %c0_i32_1 = arith.constant 0 : i32
    return %c0_i32, %c0_i32_0 : i32, i32
  }
  func.func @transform_3(%arg0: i32) -> (i32, i32) {
    %c0_i32 = arith.constant 0 : i32
    %c0_i32_0 = arith.constant 0 : i32
    %c0_i32_1 = arith.constant 0 : i32
    return %c0_i32, %c0_i32_0 : i32, i32
  }
  func.func @transform_4(%arg0: i32) -> (i32, i32, i32) {
    %c0_i32 = arith.constant 0 : i32
    %c0_i32_0 = arith.constant 0 : i32
    %c0_i32_1 = arith.constant 0 : i32
    return %arg0, %c0_i32, %c0_i32_0 : i32, i32, i32
  }
}

</mosaic_0001>

<bundles_post_ra>
// kernel: tpu_custom_call.1
= control target key start
LH: loop header
LB: loop body
LE: loop exit
PB: predicated region body
PF: predicated region fallthrough
CT: control target
= control target key end

     0   :  { %s975_s15 = smov 0   ;;  %s1288_s0 = inlined_call_operand.vmem [shape: f32[4,192,64], index: 0, kind: input, shape index: {}]   ;;  %s1289_s1 = inlined_call_operand.vmem [shape: f32[64,32], index: 1, kind: input, shape index: {}]   ;;  %s1290_s2 = inlined_call_operand.vmem [shape: f32[96,192], index: 2, kind: input, shape index: {}]   ;;  %s1291_s3 = inlined_call_operand.vmem [shape: f32[96,32], index: 3, kind: input, shape index: {}]   ;;  %s1292_s4 = inlined_call_operand.vmem [shape: f32[4,96,32], index: 4, kind: output, shape index: {}]  }
   0x1 LB: > { %s753_s16 = sadd.s32 4294967295, %s947_s15   ;;  %p757_p0 = scmp.ge.s32.totalorder %s947_s15, 1  ;;  %s947_s15 = sphi %s975_s15, %s14_s15  }
   0x2   : > { %p162_p1 = scmp.lt.s32.totalorder %s947_s15, 5 }
   0x4   : > { %p163_p2 = pnand %p757_p0, %p162_p1 }
   0x5   : > { %p188_p3 = scmp.lt.s32.totalorder (!%p163_p2), %s753_s16, 3 }
   0x6   : > { %166 = sbr.rel (%p163_p2) target bundleno = 520 (0x208), region = 36 }
   0xb   : > { %v229_v0 = vld [vmem:[%s1289_s1 + $0x38] sm:$0xff]  ;;  %v228_v1 = vld [vmem:[%s1289_s1 + $0x30] sm:$0xff]  ;;  %v227_v2 = vld [vmem:[%s1289_s1 + $0x28] sm:$0xff]  ;;  %s1294_s16 = smov (!%p188_p3, %s753_s16), 3  ;;  %vm230_vm0 = vcmask 523264   ;;  %v949_v32 = vmov 0.0  }
   0xc   : > { %830 = vmatprep.subr.mxu0 %v229_v0  ;;  %v226_v3 = vld [vmem:[%s1289_s1 + $0x20] sm:$0xff]  ;;  %s930_s25 = smul.u32 192, %s1294_s16  ;;  %v225_v4 = vld [vmem:[%s1289_s1 + $0x18] sm:$0xff]  ;;  %v224_v6 = vld [vmem:[%s1289_s1 + $0x10] sm:$0xff]  ;;  %882 = vmatprep.subr.mxu1 %v949_v32  ;;  %vm685_vm1 = vcmask 261120  }
   0xd   : > { %831 = vmatpush3.msra.mxu0 %v229_v0  ;;  %v223_v7 = vld [vmem:[%s1289_s1 + $0x8] sm:$0xff]  ;;  %v222_v8 = vld [vmem:[%s1289_s1] sm:$0xff]  ;;  %v499_v61 = vld [vmem:[%s1290_s2 + $0x58] sm:$0xff]  ;;  %s931_s11 = smul.u32 96, %s1294_s16 }
   0xe   : > { %832 = vmatprep.subr.mxu0 %v228_v1  ;;  %s1004_s30 = scalar_lea.vmem %s1288_s0, %s930_s25  ;;  %v497_v33 = vld [vmem:[%s1290_s2 + $0x48] sm:$0xff]  ;;  %v496_v59 = vld [vmem:[%s1290_s2 + $0x40] sm:$0xff]  ;;  %v491_v62 = vld [vmem:[%s1290_s2 + $0x18] sm:$0xff] }
   0xf   : > { %833 = vmatpush3.msra.mxu0 %v228_v1  ;;  %v198_v5 = vld [vmem:[%s1004_s30] sm:$0xff]  ;;  %v199_v9 = vld [vmem:[%s1004_s30 + $0x8] sm:$0xff]  ;;  %v200_v10 = vld [vmem:[%s1004_s30 + $0x10] sm:$0xff]  ;;  %788 = vmatprep.mubr.msk.f32.mxu1 %vm230_vm0, %v497_v33  ;;  %s1229_s20 = scalar_lea.vmem %s1292_s4, %s931_s11 }
  0x10   : > { %834 = vmatprep.subr.mxu0 %v227_v2  ;;  %846 = vmatprep.mubr.msk.f32.mxu0 %vm230_vm0, %v198_v5  ;;  %v201_v11 = vld [vmem:[%s1004_s30 + $0x18] sm:$0xff]  ;;  %v202_v12 = vld [vmem:[%s1004_s30 + $0x20] sm:$0xff]  ;;  %v203_v13 = vld [vmem:[%s1004_s30 + $0x28] sm:$0xff] }
  0x11   : > { %835 = vmatpush3.msra.mxu0 %v227_v2  ;;  %v204_v14 = vld [vmem:[%s1004_s30 + $0x30] sm:$0xff]  ;;  %v205_v15 = vld [vmem:[%s1004_s30 + $0x38] sm:$0xff]  ;;  %v206_v16 = vld [vmem:[%s1004_s30 + $0x40] sm:$0xff] }
  0x12   : > { %836 = vmatprep.subr.mxu0 %v226_v3  ;;  %v207_v17 = vld [vmem:[%s1004_s30 + $0x48] sm:$0xff]  ;;  %v208_v18 = vld [vmem:[%s1004_s30 + $0x50] sm:$0xff]  ;;  %v209_v19 = vld [vmem:[%s1004_s30 + $0x58] sm:$0xff] }
  0x13   : > { %837 = vmatpush3.msra.mxu0 %v226_v3  ;;  %v210_v20 = vld [vmem:[%s1004_s30 + $0x60] sm:$0xff]  ;;  %v211_v21 = vld [vmem:[%s1004_s30 + $0x68] sm:$0xff]  ;;  %v212_v22 = vld [vmem:[%s1004_s30 + $0x70] sm:$0xff] }
  0x14   : > { %838 = vmatprep.subr.mxu0 %v225_v4  ;;  %v213_v23 = vld [vmem:[%s1004_s30 + $0x78] sm:$0xff]  ;;  %v214_v24 = vld [vmem:[%s1004_s30 + $0x80] sm:$0xff]  ;;  %v215_v25 = vld [vmem:[%s1004_s30 + $0x88] sm:$0xff] }
  0x15   : > { %839 = vmatpush3.msra.mxu0 %v225_v4  ;;  %v216_v26 = vld [vmem:[%s1004_s30 + $0x90] sm:$0xff]  ;;  %v217_v27 = vld [vmem:[%s1004_s30 + $0x98] sm:$0xff]  ;;  %v218_v28 = vld [vmem:[%s1004_s30 + $0xa0] sm:$0xff] }
  0x16   : > { %840 = vmatprep.subr.mxu0 %v224_v6  ;;  %v219_v29 = vld [vmem:[%s1004_s30 + $0xa8] sm:$0xff]  ;;  %v220_v30 = vld [vmem:[%s1004_s30 + $0xb0] sm:$0xff]  ;;  %v221_v31 = vld [vmem:[%s1004_s30 + $0xb8] sm:$0xff] }
  0x17   : > { %841 = vmatpush3.msra.mxu0 %v224_v6  ;;  %v489_v34 = vld [vmem:[%s1290_s2 + $0x8] sm:$0xff]  ;;  %v488_v60 = vld [vmem:[%s1290_s2] sm:$0xff]  ;;  %v498_v63 = vld [vmem:[%s1290_s2 + $0x50] sm:$0xff] }
  0x18   : > { %842 = vmatprep.subr.mxu0 %v223_v7  ;;  %v490_v0 = vld [vmem:[%s1290_s2 + $0x10] sm:$0xff]  ;;  %v501_v1 = vld [vmem:[%s1290_s2 + $0x68] sm:$0xff]  ;;  %v500_v3 = vld [vmem:[%s1290_s2 + $0x60] sm:$0xff] }
  0x19   : > { %843 = vmatpush3.msra.mxu0 %v223_v7  ;;  %v493_v2 = vld [vmem:[%s1290_s2 + $0x28] sm:$0xff]  ;;  %v492_v4 = vld [vmem:[%s1290_s2 + $0x20] sm:$0xff]  ;;  %v503_v5 = vld [vmem:[%s1290_s2 + $0x78] sm:$0xff] }
  0x1a   : > { %844 = vmatprep.subr.mxu0 %v222_v8  ;;  %v495_v6 = vld [vmem:[%s1290_s2 + $0x38] sm:$0xff]  ;;  %v502_v7 = vld [vmem:[%s1290_s2 + $0x70] sm:$0xff] }
  0x1b   : > { %845 = vmatpush3.msra.mxu0 %v222_v8  ;;  %v494_v8 = vld [vmem:[%s1290_s2 + $0x30] sm:$0xff] }
  0x1c   : > { %847 = vmatmul.mubr.msk.f32.vlgmr.msra.gmra.mxu0 %vm230_vm0, %v199_v9  ;;  %560 = vmatprep.subr.mxu0 %v949_v32  ;;  %v505_v9 = vld [vmem:[%s1290_s2 + $0x88] sm:$0xff] }
  0x1d   : > { %849 = vmatprep.mubr.msk.f32.mxu0 %vm230_vm0, %v200_v10  ;;  %v504_v10 = vld [vmem:[%s1290_s2 + $0x80] sm:$0xff] }
  0x20   : > { %850 = vmatmul.mubr.msk.f32.gmra.mxu0 %vm230_vm0, %v201_v11  ;;  %v507_v11 = vld [vmem:[%s1290_s2 + $0x98] sm:$0xff] }
  0x21   : > { %852 = vmatprep.mubr.msk.f32.mxu0 %vm230_vm0, %v202_v12  ;;  %v506_v12 = vld [vmem:[%s1290_s2 + $0x90] sm:$0xff] }
  0x24   : > { %853 = vmatmul.mubr.msk.f32.gmra.mxu0 %vm230_vm0, %v203_v13  ;;  %v509_v13 = vld [vmem:[%s1290_s2 + $0xa8] sm:$0xff] }
  0x25   : > { %855 = vmatprep.mubr.msk.f32.mxu0 %vm230_vm0, %v204_v14  ;;  %v508_v14 = vld [vmem:[%s1290_s2 + $0xa0] sm:$0xff] }
  0x28   : > { %856 = vmatmul.mubr.msk.f32.gmra.mxu0 %vm230_vm0, %v205_v15  ;;  %v511_v15 = vld [vmem:[%s1290_s2 + $0xb8] sm:$0xff] }
  0x29   : > { %858 = vmatprep.mubr.msk.f32.mxu0 %vm230_vm0, %v206_v16  ;;  %v510_v16 = vld [vmem:[%s1290_s2 + $0xb0] sm:$0xff] }
  0x2c   : > { %859 = vmatmul.mubr.msk.f32.gmra.mxu0 %vm230_vm0, %v207_v17  ;;  %v516_v17 = vld [vmem:[%s1291_s3 + $0x20] sm:$0xff] }
  0x2d   : > { %861 = vmatprep.mubr.msk.f32.mxu0 %vm230_vm0, %v208_v18  ;;  %v512_v18 = vld [vmem:[%s1291_s3] sm:$0xff] }
  0x30   : > { %862 = vmatmul.mubr.msk.f32.gmra.mxu0 %vm230_vm0, %v209_v19 }
  0x31   : > { %864 = vmatprep.mubr.msk.f32.mxu0 %vm230_vm0, %v210_v20 }
  0x34   : > { %865 = vmatmul.mubr.msk.f32.gmra.mxu0 %vm230_vm0, %v211_v21 }
  0x35   : > { %867 = vmatprep.mubr.msk.f32.mxu0 %vm230_vm0, %v212_v22 }
  0x38   : > { %868 = vmatmul.mubr.msk.f32.gmra.mxu0 %vm230_vm0, %v213_v23 }
  0x39   : > { %870 = vmatprep.mubr.msk.f32.mxu0 %vm230_vm0, %v214_v24  ;;  %v517_v24 = vld [vmem:[%s1291_s3 + $0x28] sm:$0xff] }
  0x3c   : > { %871 = vmatmul.mubr.msk.f32.gmra.mxu0 %vm230_vm0, %v215_v25 }
  0x3d   : > { %873 = vmatprep.mubr.msk.f32.mxu0 %vm230_vm0, %v216_v26  ;;  %v513_v26 = vld [vmem:[%s1291_s3 + $0x8] sm:$0xff] }
  0x40   : > { %874 = vmatmul.mubr.msk.f32.gmra.mxu0 %vm230_vm0, %v217_v27 }
  0x41   : > { %876 = vmatprep.mubr.msk.f32.mxu0 %vm230_vm0, %v218_v28 }
  0x44   : > { %877 = vmatmul.mubr.msk.f32.gmra.mxu0 %vm230_vm0, %v219_v29 }
  0x45   : > { %879 = vmatprep.mubr.msk.f32.mxu0 %vm230_vm0, %v220_v30 }
  0x48   : > { %880 = vmatmul.mubr.msk.f32.gmra.mxu0 %vm230_vm0, %v221_v31 }
  0x49   : > { %784 = vmatprep.mubr.msk.f32.mxu0 %vm230_vm0, %v489_v34  ;;  %v514_v34 = vld [vmem:[%s1291_s3 + $0x10] sm:$0xff] }
  0xdc   : > { %v1073_v35 = vpop.f32.mrf.mxu0 }
  0xde   : > { %v1075_v36 = vpop.f32.mrf.mxu0 }
  0xe0   : > { %v1077_v37 = vpop.f32.mrf.mxu0 }
  0xe2   : > { %v1079_v38 = vpop.f32.mrf.mxu0 }
  0xe4   : > { %v854_v39 = vpop.f32.mrf.mxu0 }
  0xe6   : > { %v389_v40 = vpop.f32.mrf.mxu0 }
  0xe8   : > { %v857_v41 = vpop.f32.mrf.mxu0 }
  0xea   : > { %v399_v42 = vpop.f32.mrf.mxu0 }
  0xec   : > { %v860_v43 = vpop.f32.mrf.mxu0 }
  0xee   : > { %v409_v44 = vpop.f32.mrf.mxu0 }
  0xf0   : > { %v863_v45 = vpop.f32.mrf.mxu0 }
  0xf2   : > { %v419_v46 = vpop.f32.mrf.mxu0 }
  0xf4   : > { %v866_v47 = vpop.f32.mrf.mxu0 }
  0xf6   : > { %v429_v48 = vpop.f32.mrf.mxu0 }
  0xf8   : > { %v869_v49 = vpop.f32.mrf.mxu0 }
  0xf9   : > { %561 = vmatpush1.msra.mxu0 %v869_v49  ;;  %906 = vmatpush1.msra.mxu1 %v869_v49 }
  0xfa   : > { %v439_v50 = vpop.f32.mrf.mxu0  ;;  %562 = vmatprep.subr.mxu0 %v949_v32  ;;  %883 = vmatprep.subr.mxu1 %v949_v32 }
  0xfb   : > { %563 = vmatpush1.msra.mxu0 %v439_v50  ;;  %907 = vmatpush1.msra.mxu1 %v439_v50 }
  0xfc   : > { %564 = vmatprep.subr.mxu0 %v949_v32  ;;  %884 = vmatprep.subr.mxu1 %v949_v32  ;;  %v1087_v51 = vpop.f32.mrf.mxu0 }
  0xfd   : > { %565 = vmatpush1.msra.mxu0 %v866_v47  ;;  %908 = vmatpush1.msra.mxu1 %v866_v47 }
  0xfe   : > { %566 = vmatprep.subr.mxu0 %v949_v32  ;;  %885 = vmatprep.subr.mxu1 %v949_v32  ;;  %v1093_v52 = vpop.f32.mrf.mxu0 }
  0xff   : > { %567 = vmatpush1.msra.mxu0 %v429_v48  ;;  %909 = vmatpush1.msra.mxu1 %v429_v48  ;;  %v520_v48 = vld [vmem:[%s1291_s3 + $0x40] sm:$0xff] }
 0x100   : > { %568 = vmatprep.subr.mxu0 %v949_v32  ;;  %886 = vmatprep.subr.mxu1 %v949_v32  ;;  %v875_v53 = vpop.f32.mrf.mxu0 }
 0x101   : > { %569 = vmatpush1.msra.mxu0 %v863_v45  ;;  %910 = vmatpush1.msra.mxu1 %v863_v45 }
 0x102   : > { %570 = vmatprep.subr.mxu0 %v949_v32  ;;  %887 = vmatprep.subr.mxu1 %v949_v32  ;;  %v459_v54 = vpop.f32.mrf.mxu0 }
 0x103   : > { %571 = vmatpush1.msra.mxu0 %v419_v46  ;;  %911 = vmatpush1.msra.mxu1 %v419_v46 }
 0x104   : > { %572 = vmatprep.subr.mxu0 %v949_v32  ;;  %888 = vmatprep.subr.mxu1 %v949_v32  ;;  %v878_v55 = vpop.f32.mrf.mxu0 }
 0x105   : > { %573 = vmatpush1.msra.mxu0 %v860_v43  ;;  %912 = vmatpush1.msra.mxu1 %v860_v43 }
 0x106   : > { %574 = vmatprep.subr.mxu0 %v949_v32  ;;  %889 = vmatprep.subr.mxu1 %v949_v32  ;;  %v469_v56 = vpop.f32.mrf.mxu0 }
 0x107   : > { %575 = vmatpush1.msra.mxu0 %v409_v44  ;;  %913 = vmatpush1.msra.mxu1 %v409_v44 }
 0x108   : > { %576 = vmatprep.subr.mxu0 %v949_v32  ;;  %890 = vmatprep.subr.mxu1 %v949_v32  ;;  %v881_v57 = vpop.f32.mrf.mxu0 }
 0x109   : > { %577 = vmatpush1.msra.mxu0 %v857_v41  ;;  %914 = vmatpush1.msra.mxu1 %v857_v41 }
 0x10a   : > { %578 = vmatprep.subr.mxu0 %v949_v32  ;;  %891 = vmatprep.subr.mxu1 %v949_v32  ;;  %v479_v58 = vpop.f32.mrf.mxu0 }
 0x10b   : > { %579 = vmatpush1.msra.mxu0 %v399_v42  ;;  %915 = vmatpush1.msra.mxu1 %v399_v42  ;;  %v515_v42 = vld [vmem:[%s1291_s3 + $0x18] sm:$0xff] }
 0x10c   : > { %580 = vmatprep.subr.mxu0 %v949_v32  ;;  %892 = vmatprep.subr.mxu1 %v949_v32 }
 0x10d   : > { %581 = vmatpush1.msra.mxu0 %v854_v39  ;;  %916 = vmatpush1.msra.mxu1 %v854_v39 }
 0x10e   : > { %582 = vmatprep.subr.mxu0 %v949_v32  ;;  %893 = vmatprep.subr.mxu1 %v949_v32 }
 0x10f   : > { %583 = vmatpush1.msra.mxu0 %v389_v40  ;;  %917 = vmatpush1.msra.mxu1 %v389_v40  ;;  %v519_v40 = vld [vmem:[%s1291_s3 + $0x38] sm:$0xff] }
 0x110   : > { %584 = vmatprep.subr.mxu0 %v949_v32  ;;  %894 = vmatprep.subr.mxu1 %v949_v32 }
 0x111   : > { %585 = vmatpush1.msra.mxu0 %v1077_v37  ;;  %918 = vmatpush1.msra.mxu1 %v1077_v37 }
 0x112   : > { %586 = vmatprep.subr.mxu0 %v949_v32  ;;  %895 = vmatprep.subr.mxu1 %v949_v32 }
 0x113   : > { %587 = vmatpush1.msra.mxu0 %v1079_v38  ;;  %919 = vmatpush1.msra.mxu1 %v1079_v38 }
 0x114   : > { %588 = vmatprep.subr.mxu0 %v949_v32  ;;  %896 = vmatprep.subr.mxu1 %v949_v32 }
 0x115   : > { %589 = vmatpush1.msra.mxu0 %v1073_v35  ;;  %920 = vmatpush1.msra.mxu1 %v1073_v35 }
 0x116   : > { %590 = vmatprep.subr.mxu0 %v949_v32  ;;  %897 = vmatprep.subr.mxu1 %v949_v32 }
 0x117   : > { %591 = vmatpush1.msra.mxu0 %v1075_v36  ;;  %921 = vmatpush1.msra.mxu1 %v1075_v36 }
 0x118   : > { %608 = vmatprep.subr.mxu0 %v949_v32  ;;  %898 = vmatprep.subr.mxu1 %v949_v32 }
 0x119   : > { %609 = vmatpush2.msra.mxu0 %v881_v57  ;;  %922 = vmatpush2.msra.mxu1 %v881_v57  ;;  %v522_v57 = vld [vmem:[%s1291_s3 + $0x50] sm:$0xff] }
 0x11a   : > { %610 = vmatprep.subr.mxu0 %v949_v32  ;;  %899 = vmatprep.subr.mxu1 %v949_v32 }
 0x11b   : > { %611 = vmatpush2.msra.mxu0 %v479_v58  ;;  %923 = vmatpush2.msra.mxu1 %v479_v58 }
 0x11c   : > { %612 = vmatprep.subr.mxu0 %v949_v32  ;;  %900 = vmatprep.subr.mxu1 %v949_v32 }
 0x11d   : > { %613 = vmatpush2.msra.mxu0 %v878_v55  ;;  %924 = vmatpush2.msra.mxu1 %v878_v55 }
 0x11e   : > { %614 = vmatprep.subr.mxu0 %v949_v32  ;;  %901 = vmatprep.subr.mxu1 %v949_v32 }
 0x11f   : > { %615 = vmatpush2.msra.mxu0 %v469_v56  ;;  %925 = vmatpush2.msra.mxu1 %v469_v56 }
 0x120   : > { %616 = vmatprep.subr.mxu0 %v949_v32  ;;  %902 = vmatprep.subr.mxu1 %v949_v32 }
 0x121   : > { %617 = vmatpush2.msra.mxu0 %v875_v53  ;;  %926 = vmatpush2.msra.mxu1 %v875_v53  ;;  %v521_v53 = vld [vmem:[%s1291_s3 + $0x48] sm:$0xff] }
 0x122   : > { %618 = vmatprep.subr.mxu0 %v949_v32  ;;  %903 = vmatprep.subr.mxu1 %v949_v32 }
 0x123   : > { %619 = vmatpush2.msra.mxu0 %v459_v54  ;;  %927 = vmatpush2.msra.mxu1 %v459_v54 }
 0x124   : > { %620 = vmatprep.subr.mxu0 %v949_v32  ;;  %904 = vmatprep.subr.mxu1 %v949_v32 }
 0x125   : > { %621 = vmatpush2.msra.mxu0 %v1087_v51  ;;  %928 = vmatpush2.msra.mxu1 %v1087_v51 }
 0x126   : > { %622 = vmatprep.subr.mxu0 %v949_v32  ;;  %905 = vmatprep.subr.mxu1 %v949_v32  ;;  %v518_v32 = vld [vmem:[%s1291_s3 + $0x30] sm:$0xff] }
 0x127   : > { %623 = vmatpush2.msra.mxu0 %v1093_v52  ;;  %929 = vmatpush2.msra.mxu1 %v1093_v52 }
 0x128   : > { %645 = vmatmul.mubr.f32.vlgmr.msra.gmra.mxu1 %v496_v59  ;;  %625 = vmatmul.mubr.f32.vlgmr.msra.gmra.mxu0 %v488_v60 }
 0x129   : > { %789 = vmatprep.mubr.msk.f32.mxu1 %vm230_vm0, %v499_v61  ;;  %785 = vmatprep.mubr.msk.f32.mxu0 %vm230_vm0, %v491_v62  ;;  %v523_v61 = vld [vmem:[%s1291_s3 + $0x58] sm:$0xff] }
 0x12c   : > { %650 = vmatmul.mubr.f32.gmra.mxu1 %v498_v63  ;;  %630 = vmatmul.mubr.f32.gmra.mxu0 %v490_v0 }
 0x12d   : > { %790 = vmatprep.mubr.msk.f32.mxu1 %vm230_vm0, %v501_v1  ;;  %786 = vmatprep.mubr.msk.f32.mxu0 %vm230_vm0, %v493_v2 }
 0x130   : > { %655 = vmatmul.mubr.f32.gmra.mxu1 %v500_v3  ;;  %635 = vmatmul.mubr.f32.gmra.mxu0 %v492_v4 }
 0x131   : > { %791 = vmatprep.mubr.msk.f32.mxu1 %vm230_vm0, %v503_v5  ;;  %787 = vmatprep.mubr.msk.f32.mxu0 %vm230_vm0, %v495_v6 }
 0x134   : > { %660 = vmatmul.mubr.f32.gmra.mxu1 %v502_v7  ;;  %640 = vmatmul.mubr.f32.gmra.mxu0 %v494_v8 }
 0x135   : > { %792 = vmatprep.mubr.msk.f32.mxu1 %vm230_vm0, %v505_v9 }
 0x138   : > { %665 = vmatmul.mubr.f32.gmra.mxu1 %v504_v10 }
 0x139   : > { %793 = vmatprep.mubr.msk.f32.mxu1 %vm230_vm0, %v507_v11 }
 0x13c   : > { %670 = vmatmul.mubr.f32.gmra.mxu1 %v506_v12 }
 0x13d   : > { %794 = vmatprep.mubr.msk.f32.mxu1 %vm230_vm0, %v509_v13 }
 0x140   : > { %675 = vmatmul.mubr.f32.gmra.mxu1 %v508_v14 }
 0x141   : > { %795 = vmatprep.mubr.msk.f32.mxu1 %vm230_vm0, %v511_v15 }
 0x144   : > { %680 = vmatmul.mubr.f32.gmra.mxu1 %v510_v16 }
 0x1e8   : > { %v646_v19 = vpop.f32.mrf.mxu1  ;;  %v626_v20 = vpop.f32.mrf.mxu0 }
 0x1e9   : > { %v647_v21 = vadd.f32 %v646_v19, %v516_v17  ;;  %v627_v22 = vadd.f32 %v626_v20, %v512_v18 }
 0x1ea   : > { %v648_v23 = vpop.f32.mrf.mxu1  ;;  %v628_v25 = vpop.f32.mrf.mxu0 }
 0x1eb   : > { %690 = vst.msk [vmem:[%s1229_s20 + $0x20] sm:$0xff] %vm685_vm1, %v647_v21  ;;  %686 = vst.msk [vmem:[%s1229_s20] sm:$0xff] %vm685_vm1, %v627_v22 }
 0x1ec   : > { %v651_v27 = vpop.f32.mrf.mxu1  ;;  %v631_v28 = vpop.f32.mrf.mxu0 }
 0x1ed   : > { %v652_v29 = vadd.f32 %v651_v27, %v517_v24  ;;  %v632_v30 = vadd.f32 %v631_v28, %v513_v26 }
 0x1ee   : > { %v653_v31 = vpop.f32.mrf.mxu1  ;;  %v633_v33 = vpop.f32.mrf.mxu0 }
 0x1ef   : > { %691 = vst.msk [vmem:[%s1229_s20 + $0x28] sm:$0xff] %vm685_vm1, %v652_v29  ;;  %687 = vst.msk [vmem:[%s1229_s20 + $0x8] sm:$0xff] %vm685_vm1, %v632_v30 }
 0x1f0   : > { %v656_v35 = vpop.f32.mrf.mxu1  ;;  %v636_v36 = vpop.f32.mrf.mxu0 }
 0x1f1   : > { %v657_v37 = vadd.f32 %v656_v35, %v518_v32  ;;  %v637_v38 = vadd.f32 %v636_v36, %v514_v34 }
 0x1f2   : > { %v658_v39 = vpop.f32.mrf.mxu1  ;;  %v638_v41 = vpop.f32.mrf.mxu0 }
 0x1f3   : > { %692 = vst.msk [vmem:[%s1229_s20 + $0x30] sm:$0xff] %vm685_vm1, %v657_v37  ;;  %688 = vst.msk [vmem:[%s1229_s20 + $0x10] sm:$0xff] %vm685_vm1, %v637_v38 }
 0x1f4   : > { %v661_v43 = vpop.f32.mrf.mxu1  ;;  %v641_v44 = vpop.f32.mrf.mxu0 }
 0x1f5   : > { %v662_v45 = vadd.f32 %v661_v43, %v519_v40  ;;  %v642_v46 = vadd.f32 %v641_v44, %v515_v42 }
 0x1f6   : > { %v663_v47 = vpop.f32.mrf.mxu1  ;;  %v643_v49 = vpop.f32.mrf.mxu0 }
 0x1f7   : > { %693 = vst.msk [vmem:[%s1229_s20 + $0x38] sm:$0xff] %vm685_vm1, %v662_v45  ;;  %689 = vst.msk [vmem:[%s1229_s20 + $0x18] sm:$0xff] %vm685_vm1, %v642_v46 }
 0x1f8   : > { %v666_v50 = vpop.f32.mrf.mxu1 }
 0x1f9   : > { %v667_v51 = vadd.f32 %v666_v50, %v520_v48 }
 0x1fa   : > { %v668_v52 = vpop.f32.mrf.mxu1 }
 0x1fb   : > { %694 = vst.msk [vmem:[%s1229_s20 + $0x40] sm:$0xff] %vm685_vm1, %v667_v51 }
 0x1fc   : > { %v671_v54 = vpop.f32.mrf.mxu1 }
 0x1fd   : > { %v672_v55 = vadd.f32 %v671_v54, %v521_v53 }
 0x1fe   : > { %v673_v56 = vpop.f32.mrf.mxu1 }
 0x1ff   : > { %695 = vst.msk [vmem:[%s1229_s20 + $0x48] sm:$0xff] %vm685_vm1, %v672_v55 }
 0x200   : > { %v676_v58 = vpop.f32.mrf.mxu1 }
 0x201   : > { %v677_v59 = vadd.f32 %v676_v58, %v522_v57 }
 0x202   : > { %v678_v60 = vpop.f32.mrf.mxu1 }
 0x203   : > { %696 = vst.msk [vmem:[%s1229_s20 + $0x50] sm:$0xff] %vm685_vm1, %v677_v59 }
 0x204   : > { %v681_v62 = vpop.f32.mrf.mxu1 }
 0x205   : > { %v682_v63 = vadd.f32 %v681_v62, %v523_v61 }
 0x206   : > { %v683_v0 = vpop.f32.mrf.mxu1 }
 0x207   : > { %697 = vst.msk [vmem:[%s1229_s20 + $0x58] sm:$0xff] %vm685_vm1, %v682_v63 }
 0x208 PF: > { %s14_s15 = sadd.s32 1, %s947_s15  }
 0x209   : > { %p11_p4 = scmp.ge.s32.totalorder %s14_s15, 6  }
 0x20b   :  { %13 = sbr.rel (!%p11_p4) target bundleno = 1 (0x1), region = 66 }

</bundles_post_ra>
